<compile_context>
chip_gen: v7x
topology: tpu7x:2x2x1
jax: 0.10.0
libtpu: 0.0.40
codegen_flags: <defaults>
</compile_context>

<pallas_src>
import functools

import jax
import jax.numpy as jnp
from jax.experimental import pallas as pl
from jax.experimental.pallas import tpu as pltpu


# ----------------------------------------------------------------------------
# Fused kernel: encode -> AWGN channel -> decode, all in VMEM.
# ----------------------------------------------------------------------------
def _base_net_kernel(
    x_ref,        # (TILE_N, D)  f32
    noise_ref,    # (TILE_N, K)  f32
    w_enc_ref,    # (D, K)       bf16  (weight-resident)
    b_enc_ref,    # (1, K)       f32
    w_dec_ref,    # (K, D)       bf16  (weight-resident)
    b_dec_ref,    # (1, D)       f32
    enc_ref,      # (TILE_N, K)  f32  out: encoding
    chn_ref,      # (TILE_N, K)  f32  out: encoding_with_noise
    dec_ref,      # (TILE_N, D)  f32  out: decoding (flat)
    *, sigma,
):
    # --- encoder: tanh(x @ w_enc + b_enc) ------------------------------------
    x_bf = x_ref[...].astype(jnp.bfloat16)
    z_enc = jnp.dot(x_bf, w_enc_ref[...], preferred_element_type=jnp.float32)
    enc = jnp.tanh(z_enc + b_enc_ref[...])          # f32 activation (EUP)
    enc_ref[...] = enc

    # --- AWGN channel: per-sample power normalize + noise --------------------
    power = jnp.mean(enc * enc, axis=1, keepdims=True)   # lane reduction (XLU)
    y = enc * jax.lax.rsqrt(power + 1e-8) + jnp.float32(sigma) * noise_ref[...]
    chn_ref[...] = y

    # --- decoder: sigmoid(y @ w_dec + b_dec) ----------------------------------
    z_dec = jnp.dot(y.astype(jnp.bfloat16), w_dec_ref[...],
                    preferred_element_type=jnp.float32)
    dec_ref[...] = jax.nn.sigmoid(z_dec + b_dec_ref[...])


def _round_up(x, m):
    return (x + m - 1) // m * m


# ----------------------------------------------------------------------------
# Wrapper: pads batch, builds grid/specs, slices/reshapes outputs.
# ----------------------------------------------------------------------------
def base_net_forward(x, params, noise, sigma=0.1, tile_n=None):
    """Mirrors base_net.forward: returns (encoding, encoding_with_noise, decoding)."""
    N, C, H, W = x.shape
    D = C * H * W
    K = params["w_enc"].shape[1]

    x_flat = x.reshape(N, D).astype(jnp.float32)
    noise = noise.astype(jnp.float32)

    # Batch tiling: pad to an f32-sublane-friendly multiple; grid over batch.
    if tile_n is None:
        tile_n = 8 if N <= 8 else min(128, _round_up(N, 8))
    n_pad = _round_up(N, tile_n)
    if n_pad != N:
        x_flat = jnp.pad(x_flat, ((0, n_pad - N), (0, 0)))
        noise = jnp.pad(noise, ((0, n_pad - N), (0, 0)))
    grid = (n_pad // tile_n,)

    w_enc = params["w_enc"].astype(jnp.bfloat16)
    w_dec = params["w_dec"].astype(jnp.bfloat16)
    b_enc = params["b_enc"].astype(jnp.float32)
    b_dec = params["b_dec"].astype(jnp.float32)

    # Advisory cost estimate for XLA's scheduler around the custom call.
    flops = 2 * n_pad * D * K * 2                      # two matmuls
    transcendentals = n_pad * (K + 1 + D)              # tanh, rsqrt, sigmoid
    bytes_accessed = (
        x_flat.size * 4 + noise.size * 4
        + w_enc.size * 2 + w_dec.size * 2
        + b_enc.size * 4 + b_dec.size * 4
        + n_pad * (K + K + D) * 4
    )

    enc, chn, dec_flat = pl.pallas_call(
        functools.partial(_base_net_kernel, sigma=float(sigma)),
        out_shape=(
            jax.ShapeDtypeStruct((n_pad, K), jnp.float32),
            jax.ShapeDtypeStruct((n_pad, K), jnp.float32),
            jax.ShapeDtypeStruct((n_pad, D), jnp.float32),
        ),
        grid_spec=pltpu.PrefetchScalarGridSpec(
            num_scalar_prefetch=0,
            grid=grid,
            in_specs=[
                pl.BlockSpec((tile_n, D), lambda i: (i, 0)),   # x tile
                pl.BlockSpec((tile_n, K), lambda i: (i, 0)),   # noise tile
                pl.BlockSpec((D, K), lambda i: (0, 0)),        # w_enc (resident)
                pl.BlockSpec((1, K), lambda i: (0, 0)),        # b_enc (resident)
                pl.BlockSpec((K, D), lambda i: (0, 0)),        # w_dec (resident)
                pl.BlockSpec((1, D), lambda i: (0, 0)),        # b_dec (resident)
            ],
            out_specs=[
                pl.BlockSpec((tile_n, K), lambda i: (i, 0)),   # encoding
                pl.BlockSpec((tile_n, K), lambda i: (i, 0)),   # encoding+noise
                pl.BlockSpec((tile_n, D), lambda i: (i, 0)),   # decoding (lane-dense)
            ],
        ),
        compiler_params=pltpu.CompilerParams(
            dimension_semantics=("parallel",),
        ),
        cost_estimate=pl.CostEstimate(
            flops=flops,
            transcendentals=transcendentals,
            bytes_accessed=bytes_accessed,
        ),
    )(x_flat, noise, w_enc, b_enc, w_dec, b_dec)

    encoding = enc[:N]
    encoding_with_noise = chn[:N]
    # TODO(synk): the original isc_model's decode path also receives x; this
    # concrete decoder reconstructs from the received channel signal only.
    decoding = dec_flat[:N].reshape(N, C, H, W)
    return encoding, encoding_with_noise, decoding


# ----------------------------------------------------------------------------
# Pure-JAX reference (same bf16-quantized weights, f32 math) for a sanity check.
# ----------------------------------------------------------------------------
def base_net_reference(x, params, noise, sigma=0.1):
    N, C, H, W = x.shape
    D = C * H * W
    x_flat = x.reshape(N, D).astype(jnp.float32)
    w_enc = params["w_enc"].astype(jnp.bfloat16).astype(jnp.float32)
    w_dec = params["w_dec"].astype(jnp.bfloat16).astype(jnp.float32)
    enc = jnp.tanh(x_flat @ w_enc + params["b_enc"])
    power = jnp.mean(enc * enc, axis=1, keepdims=True)
    y = enc * jax.lax.rsqrt(power + 1e-8) + sigma * noise
    dec = jax.nn.sigmoid(y @ w_dec + params["b_dec"])
    return enc, y, dec.reshape(N, C, H, W)


# ----------------------------------------------------------------------------
# Deterministic parameter init + driver
# ----------------------------------------------------------------------------
def init_params(key, D, K):
    k1, k2, k3, k4 = jax.random.split(key, 4)
    scale_enc = 1.0 / jnp.sqrt(jnp.float32(D))
    scale_dec = 1.0 / jnp.sqrt(jnp.float32(K))
    return {
        "w_enc": jax.random.normal(k1, (D, K), jnp.float32) * scale_enc,
        "b_enc": jax.random.normal(k2, (1, K), jnp.float32) * 0.01,
        "w_dec": jax.random.normal(k3, (K, D), jnp.float32) * scale_dec,
        "b_dec": jax.random.normal(k4, (1, D), jnp.float32) * 0.01,
    }


if __name__ == "__main__":
    # Small shapes consistent with an image-semantic-coding forward pass.
    N, C, H, W = 2, 4, 16, 16          # x: NCHW
    D = C * H * W                      # 1024 flattened features
    K = 128                            # latent / channel-symbol dimension

    root = jax.random.PRNGKey(0)
    k_x, k_p, k_n = jax.random.split(root, 3)

    x = jax.random.normal(k_x, (N, C, H, W), jnp.float32)
    params = init_params(k_p, D, K)
    noise = jax.random.normal(k_n, (N, K), jnp.float32)   # deterministic AWGN draw

    encoding, encoding_with_noise, decoding = base_net_forward(
        x, params, noise, sigma=0.1
    )
    jax.block_until_ready(encoding)
    jax.block_until_ready(encoding_with_noise)
    jax.block_until_ready(decoding)

    assert encoding.shape == (N, K)
    assert encoding_with_noise.shape == (N, K)
    assert decoding.shape == (N, C, H, W)

    # Sanity check against a pure-JAX reference (generous tol: bf16 weights).
    ref_enc, ref_chn, ref_dec = base_net_reference(x, params, noise, sigma=0.1)
    assert bool(jnp.all(jnp.isfinite(decoding)))
    assert bool(jnp.max(jnp.abs(encoding - ref_enc)) < 3e-2)
    assert bool(jnp.max(jnp.abs(encoding_with_noise - ref_chn)) < 3e-2)
    assert bool(jnp.max(jnp.abs(decoding - ref_dec)) < 3e-2)

    print("KERNEL_OK")
</pallas_src>

<mosaic_0001>
module attributes {stable_mosaic.version = 11 : i64} {
  func.func @_base_net_kernel(%arg0: i32, %arg1: memref<8x1024xf32, #tpu.memory_space<vmem>>, %arg2: memref<8x128xf32, #tpu.memory_space<vmem>>, %arg3: memref<1024x128xbf16, #tpu.memory_space<vmem>>, %arg4: memref<1x128xf32, #tpu.memory_space<vmem>>, %arg5: memref<128x1024xbf16, #tpu.memory_space<vmem>>, %arg6: memref<1x1024xf32, #tpu.memory_space<vmem>>, %arg7: memref<8x128xf32, #tpu.memory_space<vmem>>, %arg8: memref<8x128xf32, #tpu.memory_space<vmem>>, %arg9: memref<8x1024xf32, #tpu.memory_space<vmem>>) attributes {dimension_semantics = [#tpu.dimension_semantics<parallel>], iteration_bounds = array<i64: 1>, scalar_prefetch = 0 : i64, scratch_operands = 0 : i64, tpu.core_type = #tpu.core_type<tc>, window_params = [{transform_indices = @transform_0, window_bounds = array<i64: 8, 1024>}, {transform_indices = @transform_1, window_bounds = array<i64: 8, 128>}, {pipeline_mode = #tpu.pipeline_mode<synchronous>, transform_indices = @transform_2, window_bounds = array<i64: 1024, 128>}, {pipeline_mode = #tpu.pipeline_mode<synchronous>, transform_indices = @transform_3, window_bounds = array<i64: 1, 128>}, {pipeline_mode = #tpu.pipeline_mode<synchronous>, transform_indices = @transform_4, window_bounds = array<i64: 128, 1024>}, {pipeline_mode = #tpu.pipeline_mode<synchronous>, transform_indices = @transform_5, window_bounds = array<i64: 1, 1024>}, {transform_indices = @transform_6, window_bounds = array<i64: 8, 128>}, {transform_indices = @transform_7, window_bounds = array<i64: 8, 128>}, {transform_indices = @transform_8, window_bounds = array<i64: 8, 1024>}]} {
    %c0 = arith.constant 0 : index
    %c0_0 = arith.constant 0 : index
    %0 = vector.load %arg1[%c0, %c0_0] : memref<8x1024xf32, #tpu.memory_space<vmem>>, vector<8x1024xf32>
    %1 = arith.truncf %0 : vector<8x1024xf32> to vector<8x1024xbf16>
    %c0_1 = arith.constant 0 : index
    %c0_2 = arith.constant 0 : index
    %2 = vector.load %arg3[%c0_1, %c0_2] : memref<1024x128xbf16, #tpu.memory_space<vmem>>, vector<1024x128xbf16>
    %cst = arith.constant dense<0.000000e+00> : vector<8x128xf32>
    %3 = tpu.matmul %1, %2, %cst {dimension_numbers = #tpu.dot_dimension_numbers<[1], [0], [0], [1], [0, 0, 1, 1], [], []>} : vector<8x1024xbf16>, vector<1024x128xbf16>, vector<8x128xf32> -> vector<8x128xf32>
    %c0_3 = arith.constant 0 : index
    %c0_4 = arith.constant 0 : index
    %4 = vector.load %arg4[%c0_3, %c0_4] : memref<1x128xf32, #tpu.memory_space<vmem>>, vector<1x128xf32>
    %5 = vector.broadcast %4 : vector<1x128xf32> to vector<8x128xf32>
    %6 = arith.addf %3, %5 : vector<8x128xf32>
    %7 = math.tanh %6 : vector<8x128xf32>
    %c0_5 = arith.constant 0 : index
    %c0_6 = arith.constant 0 : index
    %8 = vector.load %arg7[%c0_5, %c0_6] : memref<8x128xf32, #tpu.memory_space<vmem>>, vector<8x128xf32>
    tpu.vector_store %arg7[%c0_5, %c0_6], %7 {strides = array<i32>} : memref<8x128xf32, #tpu.memory_space<vmem>>, vector<8x128xf32>,
    %9 = arith.mulf %7, %7 : vector<8x128xf32>
    %cst_7 = arith.constant dense<0.000000e+00> : vector<8xf32>
    %10 = vector.multi_reduction <add>, %9, %cst_7 [1] : vector<8x128xf32> to vector<8xf32>
    %11 = vector.shape_cast %10 : vector<8xf32> to vector<8x1xf32>
    %cst_8 = arith.constant 1.280000e+02 : f32
    %12 = vector.broadcast %cst_8 : f32 to vector<8x1xf32>
    %13 = arith.divf %11, %12 : vector<8x1xf32>
    %cst_9 = arith.constant 9.99999993E-9 : f32
    %14 = vector.broadcast %cst_9 : f32 to vector<8x1xf32>
    %15 = arith.addf %13, %14 : vector<8x1xf32>
    %16 = math.rsqrt %15 : vector<8x1xf32>
    %17 = vector.broadcast %16 : vector<8x1xf32> to vector<8x128xf32>
    %18 = arith.mulf %7, %17 : vector<8x128xf32>
    %c0_10 = arith.constant 0 : index
    %c0_11 = arith.constant 0 : index
    %19 = vector.load %arg2[%c0_10, %c0_11] : memref<8x128xf32, #tpu.memory_space<vmem>>, vector<8x128xf32>
    %cst_12 = arith.constant 1.000000e-01 : f32
    %20 = vector.broadcast %cst_12 : f32 to vector<8x128xf32>
    %21 = arith.mulf %20, %19 : vector<8x128xf32>
    %22 = arith.addf %18, %21 : vector<8x128xf32>
    %c0_13 = arith.constant 0 : index
    %c0_14 = arith.constant 0 : index
    %23 = vector.load %arg8[%c0_13, %c0_14] : memref<8x128xf32, #tpu.memory_space<vmem>>, vector<8x128xf32>
    tpu.vector_store %arg8[%c0_13, %c0_14], %22 {strides = array<i32>} : memref<8x128xf32, #tpu.memory_space<vmem>>, vector<8x128xf32>,
    %24 = arith.truncf %22 : vector<8x128xf32> to vector<8x128xbf16>
    %c0_15 = arith.constant 0 : index
    %c0_16 = arith.constant 0 : index
    %25 = vector.load %arg5[%c0_15, %c0_16] : memref<128x1024xbf16, #tpu.memory_space<vmem>>, vector<128x1024xbf16>
    %cst_17 = arith.constant dense<0.000000e+00> : vector<8x1024xf32>
    %26 = tpu.matmul %24, %25, %cst_17 {dimension_numbers = #tpu.dot_dimension_numbers<[1], [0], [0], [1], [0, 0, 1, 1], [], []>} : vector<8x128xbf16>, vector<128x1024xbf16>, vector<8x1024xf32> -> vector<8x1024xf32>
    %c0_18 = arith.constant 0 : index
    %c0_19 = arith.constant 0 : index
    %27 = vector.load %arg6[%c0_18, %c0_19] : memref<1x1024xf32, #tpu.memory_space<vmem>>, vector<1x1024xf32>
    %28 = vector.broadcast %27 : vector<1x1024xf32> to vector<8x1024xf32>
    %29 = arith.addf %26, %28 : vector<8x1024xf32>
    %30 = arith.negf %29 : vector<8x1024xf32>
    %31 = math.exp %30 : vector<8x1024xf32>
    %cst_20 = arith.constant 1.000000e+00 : f32
    %32 = vector.broadcast %cst_20 : f32 to vector<8x1024xf32>
    %33 = arith.addf %32, %31 : vector<8x1024xf32>
    %34 = arith.divf %32, %33 : vector<8x1024xf32>
    %c0_21 = arith.constant 0 : index
    %c0_22 = arith.constant 0 : index
    %35 = vector.load %arg9[%c0_21, %c0_22] : memref<8x1024xf32, #tpu.memory_space<vmem>>, vector<8x1024xf32>
    tpu.vector_store %arg9[%c0_21, %c0_22], %34 {strides = array<i32>} : memref<8x1024xf32, #tpu.memory_space<vmem>>, vector<8x1024xf32>,
    return
  }
  func.func @transform_0(%arg0: i32) -> (i32, i32) {
    %c0_i32 = arith.constant 0 : i32
    %c0_i32_0 = arith.constant 0 : i32
    return %arg0, %c0_i32 : i32, i32
  }
  func.func @transform_1(%arg0: i32) -> (i32, i32) {
    %c0_i32 = arith.constant 0 : i32
    %c0_i32_0 = arith.constant 0 : i32
    return %arg0, %c0_i32 : i32, i32
  }
  func.func @transform_2(%arg0: i32) -> (i32, i32) {
    %c0_i32 = arith.constant 0 : i32
    %c0_i32_0 = arith.constant 0 : i32
    %c0_i32_1 = arith.constant 0 : i32
    return %c0_i32, %c0_i32_0 : i32, i32
  }
  func.func @transform_3(%arg0: i32) -> (i32, i32) {
    %c0_i32 = arith.constant 0 : i32
    %c0_i32_0 = arith.constant 0 : i32
    %c0_i32_1 = arith.constant 0 : i32
    return %c0_i32, %c0_i32_0 : i32, i32
  }
  func.func @transform_4(%arg0: i32) -> (i32, i32) {
    %c0_i32 = arith.constant 0 : i32
    %c0_i32_0 = arith.constant 0 : i32
    %c0_i32_1 = arith.constant 0 : i32
    return %c0_i32, %c0_i32_0 : i32, i32
  }
  func.func @transform_5(%arg0: i32) -> (i32, i32) {
    %c0_i32 = arith.constant 0 : i32
    %c0_i32_0 = arith.constant 0 : i32
    %c0_i32_1 = arith.constant 0 : i32
    return %c0_i32, %c0_i32_0 : i32, i32
  }
  func.func @transform_6(%arg0: i32) -> (i32, i32) {
    %c0_i32 = arith.constant 0 : i32
    %c0_i32_0 = arith.constant 0 : i32
    return %arg0, %c0_i32 : i32, i32
  }
  func.func @transform_7(%arg0: i32) -> (i32, i32) {
    %c0_i32 = arith.constant 0 : i32
    %c0_i32_0 = arith.constant 0 : i32
    return %arg0, %c0_i32 : i32, i32
  }
  func.func @transform_8(%arg0: i32) -> (i32, i32) {
    %c0_i32 = arith.constant 0 : i32
    %c0_i32_0 = arith.constant 0 : i32
    return %arg0, %c0_i32 : i32, i32
  }
}

</mosaic_0001>

<bundles_post_ra>
// kernel: tpu_custom_call.1
= control target key start
LH: loop header
LB: loop body
LE: loop exit
PB: predicated region body
PF: predicated region fallthrough
CT: control target
= control target key end

     0   :  { %14 = vsyncpa [#allocation3], 0  ;;  %s2144_s0 = inlined_call_operand.hbm [shape: f32[8,1024], index: 0, kind: input, shape index: {}]   ;;  %s2145_s1 = inlined_call_operand.hbm [shape: f32[8,128], index: 1, kind: input, shape index: {}]   ;;  %s2146_s2 = inlined_call_operand.hbm [shape: bf16[1024,128], index: 2, kind: input, shape index: {}]   ;;  %s2147_s3 = inlined_call_operand.vmem [shape: f32[1,128], index: 3, kind: input, shape index: {}]   ;;  %s2148_s4 = inlined_call_operand.hbm [shape: bf16[128,1024], index: 4, kind: input, shape index: {}]   ;;  %s2149_s5 = inlined_call_operand.vmem [shape: f32[1,1024], index: 5, kind: input, shape index: {}]   ;;  %s2150_s6 = inlined_call_operand.hbm [shape: f32[8,128], index: 6, kind: output, shape index: {0}]   ;;  %s2151_s7 = inlined_call_operand.hbm [shape: f32[8,128], index: 7, kind: output, shape index: {1}]   ;;  %s2152_s8 = inlined_call_operand.hbm [shape: f32[8,1024], index: 8, kind: output, shape index: {2}]  }
   0x1   :  { %15 = vsyncpa [#allocation6], 0 }
   0x2   :  { %16 = vsyncpa [#allocation9], 0 }
   0x3   :  { %17 = vsyncpa [#allocation4], 0 }
   0x4   :  { %18 = vsyncpa [#allocation12], 0  ;;  %s1981_s27 = smov [#allocation5]   ;;  %s1982_s29 = smov [#allocation2]  }
   0x5   :  { %s35_s28 = sshll.u32 %s1981_s27, 4  ;;  %s25_s30 = sshll.u32 %s1982_s29, 4  ;;  %s36_s28 = int_to_ptr.vmem [resolvable:$true] %s35_s28  ;;  %s26_s30 = int_to_ptr.vmem [resolvable:$true] %s25_s30 }
   0x6   :  { %s1817_s11 = scalar_lea.hbm %s2145_s1, 128 }
   0x7   :  { %p1818_p0 = scmp.ne.s32.totalorder %s2145_s1, %s1817_s11  ;;  %p1821_p1 = scmp.lt.u32.totalorder %s1817_s11, %s2145_s1 }
   0x9   :  { %p1823_p2 = pnand %p1821_p1, %p1818_p0 }
   0xb   :  { %1826 = shalt.err (!%p1823_p2)
}
   0xc   :  { %s1827_s16 = scalar_lea.vmem %s36_s28, 128  ;;  %p1832_p4 = scmp.lt.s32.totalorder %s36_s28, %s36_s28 }
   0xd   :  { %p1828_p3 = scmp.ne.s32.totalorder %s36_s28, %s1827_s16  ;;  %p1833_p5 = scmp.lt.s32.totalorder %s1827_s16, %s1827_s16 }
   0xf   :  { %p1834_p6 = por %p1833_p5, %p1832_p4 }
  0x11   :  { %p1835_p7 = pnand %p1834_p6, %p1828_p3 }
  0x13   :  { %1838 = shalt.err (!%p1835_p7)
}
  0x14   :  { %38 = dma.hbm_to_vmem [thread:$0]  %s2145_s1, 128, %s36_s28, [#allocation6]  }
  0x15   :  { %s1839_s21 = scalar_lea.hbm %s2144_s0, 1024 }
  0x16   :  { %p1840_p8 = scmp.ne.s32.totalorder %s2144_s0, %s1839_s21  ;;  %p1843_p9 = scmp.lt.u32.totalorder %s1839_s21, %s2144_s0 }
  0x18   :  { %p1845_p10 = pnand %p1843_p9, %p1840_p8 }
  0x1a   :  { %1848 = shalt.err (!%p1845_p10)
}
  0x1b   :  { %s1849_s26 = scalar_lea.vmem %s26_s30, 1024  ;;  %p1854_p12 = scmp.lt.s32.totalorder %s26_s30, %s26_s30 }
  0x1c   :  { %p1850_p11 = scmp.ne.s32.totalorder %s26_s30, %s1849_s26  ;;  %p1855_p13 = scmp.lt.s32.totalorder %s1849_s26, %s1849_s26 }
  0x1e   :  { %p1856_p0 = por %p1855_p13, %p1854_p12 }
  0x20   :  { %p1857_p1 = pnand %p1856_p0, %p1850_p11 }
  0x22   :  { %1860 = shalt.err (!%p1857_p1)
}
  0x23   :  { %28 = dma.hbm_to_vmem [thread:$0]  %s2144_s0, 1024, %s26_s30, [#allocation3]  }
  0x24   :  { %s1983_s28 = smov [#allocation7]   ;;  %s1861_s11 = scalar_lea.hbm %s2146_s2, 8192 }
  0x25   :  { %s44_s29 = sshll.u32 %s1983_s28, 4  ;;  %p1862_p2 = scmp.ne.s32.totalorder %s2146_s2, %s1861_s11  ;;  %s45_s29 = int_to_ptr.vmem [resolvable:$true] %s44_s29 }
  0x26   :  { %p1865_p3 = scmp.lt.u32.totalorder %s1861_s11, %s2146_s2 }
  0x28   :  { %p1867_p4 = pnand %p1865_p3, %p1862_p2 }
  0x2a   :  { %1870 = shalt.err (!%p1867_p4)
}
  0x2b   :  { %s1871_s16 = scalar_lea.vmem %s45_s29, 8192  ;;  %p1876_p6 = scmp.lt.s32.totalorder %s45_s29, %s45_s29 }
  0x2c   :  { %p1872_p5 = scmp.ne.s32.totalorder %s45_s29, %s1871_s16  ;;  %p1877_p7 = scmp.lt.s32.totalorder %s1871_s16, %s1871_s16 }
  0x2e   :  { %p1878_p8 = por %p1877_p7, %p1876_p6 }
  0x30   :  { %p1879_p9 = pnand %p1878_p8, %p1872_p5 }
  0x32   :  { %1882 = shalt.err (!%p1879_p9)
}
  0x33   :  { %s1984_s0 = smov 64   ;;  %s1985_s30 = smov 4  }
  0x34   :  { %50 = dma.hbm_to_vmem [thread:$0]  %s2146_s2, 8192, %s45_s29, [#allocation6], %s1984_s0, %s1984_s0, %s1985_s30  }
  0x35   :  { %s1986_s19 = smov [#allocation8]   ;;  %s1883_s23 = scalar_lea.hbm %s2148_s4, 8192 }
  0x36   :  { %s58_s20 = sshll.u32 %s1986_s19, 4  ;;  %p1884_p10 = scmp.ne.s32.totalorder %s2148_s4, %s1883_s23  ;;  %s59_s20 = int_to_ptr.vmem [resolvable:$true] %s58_s20 }
  0x37   :  { %p1887_p11 = scmp.lt.u32.totalorder %s1883_s23, %s2148_s4 }
  0x39   :  { %p1889_p12 = pnand %p1887_p11, %p1884_p10 }
  0x3b   :  { %1892 = shalt.err (!%p1889_p12)
}
  0x3c   :  { %s1893_s27 = scalar_lea.vmem %s59_s20, 8192  ;;  %p1898_p0 = scmp.lt.s32.totalorder %s59_s20, %s59_s20 }
  0x3d   :  { %p1894_p13 = scmp.ne.s32.totalorder %s59_s20, %s1893_s27  ;;  %p1899_p1 = scmp.lt.s32.totalorder %s1893_s27, %s1893_s27 }
  0x3f   :  { %p1900_p2 = por %p1899_p1, %p1898_p0 }
  0x41   :  { %p1901_p3 = pnand %p1900_p2, %p1894_p13 }
  0x43   :  { %1904 = shalt.err (!%p1901_p3)
}
  0x44   :  { %s1987_s2 = smov 512   ;;  %s1988_s28 = smov 32  }
  0x45   :  { %64 = dma.hbm_to_vmem [thread:$0]  %s2148_s4, 8192, %s59_s20, [#allocation9], %s1987_s2, %s1987_s2, %s1988_s28  }
  0x46   :  { %1971 = dma.done.wait [#allocation3], 1024  }
  0x47   :  { %1972 = vsyncadd [#allocation3], 4294966272 }
  0x48   :  { %1973 = dma.done.wait [#allocation6], 8320  }
  0x49   :  { %1974 = vsyncadd [#allocation6], 4294958976 }
  0x4a   :  { %1975 = dma.done.wait [#allocation9], 8192  }
  0x4b   :  { %1976 = vsyncadd [#allocation9], 4294959104  ;;  %v1717_v0 = vld [vmem:[#allocation7 + $0x40] sm:$0xff]   ;;  %v1721_v4 = vld [vmem:[#allocation7 + $0x48] sm:$0xff]   ;;  %s1991_s12 = smov [#allocation10]  }
  0x4c   :  { %v1718_v1 = vld [vmem:[#allocation7 + $0xc0] sm:$0xff]   ;;  %1617 = vmatprep.subr.bf16.mxu0 %v1717_v0  ;;  %v1722_v5 = vld [vmem:[#allocation7 + $0xc8] sm:$0xff]   ;;  %v1725_v8 = vld [vmem:[#allocation7 + $0x50] sm:$0xff]   ;;  %s1442_s13 = sshll.u32 %s1991_s12, 4  ;;  %s1443_s13 = int_to_ptr.vmem [resolvable:$true] %s1442_s13 }
  0x4d   :  { %v1719_v2 = vld [vmem:[#allocation7] sm:$0xff]   ;;  %1639 = vmatprep.subr.bf16.mxu1 %v1718_v1  ;;  %v1723_v6 = vld [vmem:[#allocation7 + $0x8] sm:$0xff]   ;;  %v1726_v9 = vld [vmem:[#allocation7 + $0xd0] sm:$0xff]  }
  0x4e   :  { %v1720_v3 = vld [vmem:[#allocation7 + $0x80] sm:$0xff]   ;;  %1618 = vmatpush3.bf16.msra.mxu0 %v1719_v2  ;;  %v1724_v7 = vld [vmem:[#allocation7 + $0x88] sm:$0xff]   ;;  %v1727_v10 = vld [vmem:[#allocation7 + $0x10] sm:$0xff]  }
  0x4f   :  { %1640 = vmatpush3.bf16.msra.mxu1 %v1720_v3  ;;  %1619 = vmatprep.subr.bf16.mxu0 %v1721_v4  ;;  %v1728_v11 = vld [vmem:[#allocation7 + $0x90] sm:$0xff]   ;;  %v1729_v12 = vld [vmem:[#allocation7 + $0x58] sm:$0xff]   ;;  %v1733_v16 = vld [vmem:[#allocation7 + $0x60] sm:$0xff]  }
  0x50   :  { %1641 = vmatprep.subr.bf16.mxu1 %v1722_v5  ;;  %v1730_v13 = vld [vmem:[#allocation7 + $0xd8] sm:$0xff]   ;;  %v1734_v17 = vld [vmem:[#allocation7 + $0xe0] sm:$0xff]   ;;  %v1737_v20 = vld [vmem:[#allocation7 + $0x68] sm:$0xff]  }
  0x51   :  { %v1731_v14 = vld [vmem:[#allocation7 + $0x18] sm:$0xff]   ;;  %v1735_v18 = vld [vmem:[#allocation7 + $0x20] sm:$0xff]   ;;  %v1738_v21 = vld [vmem:[#allocation7 + $0xe8] sm:$0xff]  }
  0x52   :  { %1620 = vmatpush3.bf16.msra.mxu0 %v1723_v6  ;;  %v1732_v15 = vld [vmem:[#allocation7 + $0x98] sm:$0xff]   ;;  %v1736_v19 = vld [vmem:[#allocation7 + $0xa0] sm:$0xff]   ;;  %v1739_v22 = vld [vmem:[#allocation7 + $0x28] sm:$0xff]  }
  0x53   :  { %1642 = vmatpush3.bf16.msra.mxu1 %v1724_v7  ;;  %1621 = vmatprep.subr.bf16.mxu0 %v1725_v8  ;;  %v1740_v23 = vld [vmem:[#allocation7 + $0xa8] sm:$0xff]   ;;  %v1741_v24 = vld [vmem:[#allocation7 + $0x70] sm:$0xff]   ;;  %v1745_v28 = vld [vmem:[#allocation7 + $0x78] sm:$0xff]  }
  0x54   :  { %1643 = vmatprep.subr.bf16.mxu1 %v1726_v9  ;;  %v1742_v25 = vld [vmem:[#allocation7 + $0xf0] sm:$0xff]   ;;  %v1746_v29 = vld [vmem:[#allocation7 + $0xf8] sm:$0xff]   ;;  %v81_v32 = vld [vmem:[#allocation2 + $0x8] sm:$0xff] }
  0x55   :  { %v1743_v26 = vld [vmem:[#allocation7 + $0x30] sm:$0xff]   ;;  %v1747_v30 = vld [vmem:[#allocation7 + $0x38] sm:$0xff]   ;;  %v89_v35 = vpack.c.bf16 %v81_v32, %v81_v32  ;;  %v82_v38 = vld [vmem:[#allocation2 + $0x10] sm:$0xff] }
  0x56   :  { %1622 = vmatpush3.bf16.msra.mxu0 %v1727_v10  ;;  %v1744_v27 = vld [vmem:[#allocation7 + $0xb0] sm:$0xff]   ;;  %v1748_v31 = vld [vmem:[#allocation7 + $0xb8] sm:$0xff]   ;;  %v90_v39 = vpack.c.bf16 %v82_v38, %v82_v38  ;;  %v1749_v40 = vld [vmem:[#allocation7 + $0x140] sm:$0xff]  }
  0x57   :  { %1644 = vmatpush3.bf16.msra.mxu1 %v1728_v11  ;;  %1623 = vmatprep.subr.bf16.mxu0 %v1729_v12  ;;  %v83_v33 = vld [vmem:[#allocation2 + $0x18] sm:$0xff]  ;;  %v80_v34 = vld [vmem:[#allocation2] sm:$0xff]  ;;  %v1750_v41 = vld [vmem:[#allocation7 + $0x1c0] sm:$0xff]  }
  0x58   :  { %1645 = vmatprep.subr.bf16.mxu1 %v1730_v13  ;;  %v91_v36 = vpack.c.bf16 %v83_v33, %v83_v33  ;;  %v88_v37 = vpack.c.bf16 %v80_v34, %v80_v34  ;;  %647 = vmatprep.mubr.bf16.mxu0 %v89_v35  ;;  %v1751_v42 = vld [vmem:[#allocation7 + $0x100] sm:$0xff]   ;;  %v1753_v44 = vld [vmem:[#allocation7 + $0x148] sm:$0xff]   ;;  %v1757_v48 = vld [vmem:[#allocation7 + $0x150] sm:$0xff]  }
  0x59   :  { %v1752_v43 = vld [vmem:[#allocation7 + $0x180] sm:$0xff]   ;;  %v1754_v45 = vld [vmem:[#allocation7 + $0x1c8] sm:$0xff]   ;;  %v1758_v49 = vld [vmem:[#allocation7 + $0x1d0] sm:$0xff]  }
  0x5a   :  { %1624 = vmatpush3.bf16.msra.mxu0 %v1731_v14  ;;  %687 = vmatprep.mubr.bf16.mxu1 %v91_v36  ;;  %v1755_v46 = vld [vmem:[#allocation7 + $0x108] sm:$0xff]   ;;  %v1759_v50 = vld [vmem:[#allocation7 + $0x110] sm:$0xff]   ;;  %v1761_v52 = vld [vmem:[#allocation7 + $0x158] sm:$0xff]  }
  0x5b   :  { %1646 = vmatpush3.bf16.msra.mxu1 %v1732_v15  ;;  %1625 = vmatprep.subr.bf16.mxu0 %v1733_v16  ;;  %v1756_v47 = vld [vmem:[#allocation7 + $0x188] sm:$0xff]   ;;  %v1760_v51 = vld [vmem:[#allocation7 + $0x190] sm:$0xff]   ;;  %v1762_v53 = vld [vmem:[#allocation7 + $0x1d8] sm:$0xff]  }
  0x5c   :  { %1647 = vmatprep.subr.bf16.mxu1 %v1734_v17  ;;  %v1763_v54 = vld [vmem:[#allocation7 + $0x118] sm:$0xff]   ;;  %v1765_v56 = vld [vmem:[#allocation7 + $0x160] sm:$0xff]   ;;  %v1769_v60 = vld [vmem:[#allocation7 + $0x168] sm:$0xff]  }
  0x5d   :  { %v1764_v55 = vld [vmem:[#allocation7 + $0x198] sm:$0xff]   ;;  %v1766_v57 = vld [vmem:[#allocation7 + $0x1e0] sm:$0xff]   ;;  %v1770_v61 = vld [vmem:[#allocation7 + $0x1e8] sm:$0xff]  }
  0x5e   :  { %1626 = vmatpush3.bf16.msra.mxu0 %v1735_v18  ;;  %v1767_v58 = vld [vmem:[#allocation7 + $0x120] sm:$0xff]   ;;  %v1771_v62 = vld [vmem:[#allocation7 + $0x128] sm:$0xff]   ;;  %v1773_v0 = vld [vmem:[#allocation7 + $0x170] sm:$0xff]  }
  0x5f   :  { %1648 = vmatpush3.bf16.msra.mxu1 %v1736_v19  ;;  %1627 = vmatprep.subr.bf16.mxu0 %v1737_v20  ;;  %v1768_v59 = vld [vmem:[#allocation7 + $0x1a0] sm:$0xff]   ;;  %v1772_v63 = vld [vmem:[#allocation7 + $0x1a8] sm:$0xff]   ;;  %v1774_v1 = vld [vmem:[#allocation7 + $0x1f0] sm:$0xff]  }
  0x60   :  { %1649 = vmatprep.subr.bf16.mxu1 %v1738_v21  ;;  %v1775_v2 = vld [vmem:[#allocation7 + $0x130] sm:$0xff]   ;;  %v1777_v4 = vld [vmem:[#allocation7 + $0x178] sm:$0xff]   ;;  %v85_v8 = vld [vmem:[#allocation2 + $0x28] sm:$0xff] }
  0x61   :  { %v1776_v3 = vld [vmem:[#allocation7 + $0x1b0] sm:$0xff]   ;;  %v1778_v5 = vld [vmem:[#allocation7 + $0x1f8] sm:$0xff]   ;;  %v93_v10 = vpack.c.bf16 %v85_v8, %v85_v8  ;;  %v86_v13 = vld [vmem:[#allocation2 + $0x30] sm:$0xff] }
  0x62   :  { %1628 = vmatpush3.bf16.msra.mxu0 %v1739_v22  ;;  %v1779_v6 = vld [vmem:[#allocation7 + $0x138] sm:$0xff]   ;;  %v87_v9 = vld [vmem:[#allocation2 + $0x38] sm:$0xff]  ;;  %v94_v15 = vpack.c.bf16 %v86_v13, %v86_v13  ;;  %v790_v16 = vld [vmem:[#allocation8] sm:$0xff] }
  0x63   :  { %1650 = vmatpush3.bf16.msra.mxu1 %v1740_v23  ;;  %1629 = vmatprep.subr.bf16.mxu0 %v1741_v24  ;;  %v1780_v7 = vld [vmem:[#allocation7 + $0x1b8] sm:$0xff]   ;;  %v95_v11 = vpack.c.bf16 %v87_v9, %v87_v9  ;;  %v794_v17 = vld [vmem:[#allocation8 + $0x20] sm:$0xff]  ;;  %v791_v18 = vld [vmem:[#allocation8 + $0x8] sm:$0xff] }
  0x64   :  { %1651 = vmatprep.subr.bf16.mxu1 %v1742_v25  ;;  %v84_v12 = vld [vmem:[#allocation2 + $0x20] sm:$0xff]  ;;  %v1545_v19 = vcombine.low %v790_v16, %v794_v17  ;;  %v1546_v20 = vcombine.high %v790_v16, %v794_v17  ;;  %v795_v21 = vld [vmem:[#allocation8 + $0x28] sm:$0xff]  ;;  %v798_v22 = vld [vmem:[#allocation8 + $0x40] sm:$0xff] }
  0x65   :  { %v92_v14 = vpack.c.bf16 %v84_v12, %v84_v12  ;;  %v802_v23 = vld [vmem:[#allocation8 + $0x60] sm:$0xff]  ;;  %v1547_v24 = vcombine.low %v791_v18, %v795_v21  ;;  %v1548_v25 = vcombine.high %v791_v18, %v795_v21  ;;  %v807_v32 = vld [vmem:[#allocation8 + $0x88] sm:$0xff] }
  0x66   :  { %1630 = vmatpush3.bf16.msra.mxu0 %v1743_v26  ;;  %v1554_v26 = vcombine.high %v798_v22, %v802_v23  ;;  %v811_v33 = vld [vmem:[#allocation8 + $0xa8] sm:$0xff]  ;;  %v1553_v34 = vcombine.low %v798_v22, %v802_v23  ;;  %v826_v12 = vld [vmem:[#allocation8 + $0x120] sm:$0xff] }
  0x67   :  { %1652 = vmatpush3.bf16.msra.mxu1 %v1744_v27  ;;  %1631 = vmatprep.subr.bf16.mxu0 %v1745_v28  ;;  %v799_v27 = vld [vmem:[#allocation8 + $0x48] sm:$0xff] }
  0x68   :  { %1653 = vmatprep.subr.bf16.mxu1 %v1746_v29  ;;  %v803_v28 = vld [vmem:[#allocation8 + $0x68] sm:$0xff]  ;;  %v806_v29 = vld [vmem:[#allocation8 + $0x80] sm:$0xff] }
  0x69   :  { %v1555_v35 = vcombine.low %v799_v27, %v803_v28  ;;  %v823_v13 = vld [vmem:[#allocation8 + $0x108] sm:$0xff] }
  0x6a   :  { %1632 = vmatpush3.bf16.msra.mxu0 %v1747_v30  ;;  %v1556_v30 = vcombine.high %v799_v27, %v803_v28  ;;  %v831_v21 = vld [vmem:[#allocation8 + $0x148] sm:$0xff] }
  0x6b   :  { %1654 = vmatpush3.bf16.msra.mxu1 %v1748_v31  ;;  %1661 = vmatprep.subr.bf16.mxu0 %v1749_v40  ;;  %v810_v31 = vld [vmem:[#allocation8 + $0xa0] sm:$0xff]  ;;  %v835_v23 = vld [vmem:[#allocation8 + $0x168] sm:$0xff] }
  0x6c   :  { %1683 = vmatprep.subr.bf16.mxu1 %v1750_v41  ;;  %v1562_v36 = vcombine.high %v806_v29, %v810_v31  ;;  %v1561_v38 = vcombine.low %v806_v29, %v810_v31  ;;  %v1588_v28 = vcombine.high %v831_v21, %v835_v23  ;;  %v839_v29 = vld [vmem:[#allocation8 + $0x188] sm:$0xff]  ;;  %v1587_v31 = vcombine.low %v831_v21, %v835_v23  ;;  %v825_v21 = vld [vmem:[#allocation8 + $0x118] sm:$0xff] }
  0x6d   :  { %648 = vmatmul.mubr.bf16.vlgmr.msra.gmra.mrb[0].mxu0 %v88_v37  ;;  %v1564_v37 = vcombine.high %v807_v32, %v811_v33 }
  0x6e   :  { %688 = vmatmul.mubr.bf16.vlgmr.msra.gmra.mrb[0].mxu1 %v90_v39  ;;  %1662 = vmatpush3.bf16.msra.mxu0 %v1751_v42  ;;  %v1563_v39 = vcombine.low %v807_v32, %v811_v33  ;;  %v1480_v42 = vld [vmem:[%s2147_s3] ss:$0 sm:$0xff]  ;;  %v846_v33 = vld [vmem:[#allocation8 + $0x1c0] sm:$0xff]  ;;  %s1990_s3 = smov [#allocation11]  }
  0x6f   :  { %1684 = vmatpush3.bf16.msra.mxu1 %v1752_v43  ;;  %1663 = vmatprep.subr.bf16.mxu0 %v1753_v44  ;;  %s1452_s11 = sshll.u32 %s1990_s3, 4  ;;  %s1453_s11 = int_to_ptr.vmem [resolvable:$true] %s1452_s11 }
  0x70   :  { %1685 = vmatprep.subr.bf16.mxu1 %v1754_v45  ;;  %727 = vmatprep.mubr.bf16.mxu0 %v93_v10  ;;  %s1905_s14 = scalar_lea.vmem %s1453_s11, 128  ;;  %p1910_p5 = scmp.lt.s32.totalorder %s1453_s11, %s1453_s11 }
  0x71   :  { %767 = vmatprep.mubr.bf16.mxu1 %v95_v11  ;;  %v822_v11 = vld [vmem:[#allocation8 + $0x100] sm:$0xff]  ;;  %p1906_p4 = scmp.ne.s32.totalorder %s1453_s11, %s1905_s14  ;;  %p1911_p6 = scmp.lt.s32.totalorder %s1905_s14, %s1905_s14 }
  0x72   :  { %1664 = vmatpush3.bf16.msra.mxu0 %v1755_v46  ;;  %v1577_v16 = vcombine.low %v822_v11, %v826_v12 }
  0x73   :  { %1686 = vmatpush3.bf16.msra.mxu1 %v1756_v47  ;;  %1665 = vmatprep.subr.bf16.mxu0 %v1757_v48  ;;  %p1912_p7 = por %p1911_p6, %p1910_p5 }
  0x74   :  { %1687 = vmatprep.subr.bf16.mxu1 %v1758_v49 }
  0x75   :  { %p1913_p8 = pnand %p1912_p7, %p1906_p4 }
  0x76   :  { %1666 = vmatpush3.bf16.msra.mxu0 %v1759_v50 }
  0x77   :  { %1688 = vmatpush3.bf16.msra.mxu1 %v1760_v51  ;;  %1667 = vmatprep.subr.bf16.mxu0 %v1761_v52 }
  0x78   :  { %1689 = vmatprep.subr.bf16.mxu1 %v1762_v53 }
  0x7a   :  { %1668 = vmatpush3.bf16.msra.mxu0 %v1763_v54 }
  0x7b   :  { %1690 = vmatpush3.bf16.msra.mxu1 %v1764_v55  ;;  %1669 = vmatprep.subr.bf16.mxu0 %v1765_v56 }
  0x7c   :  { %1691 = vmatprep.subr.bf16.mxu1 %v1766_v57 }
  0x7e   :  { %1670 = vmatpush3.bf16.msra.mxu0 %v1767_v58 }
  0x7f   :  { %1692 = vmatpush3.bf16.msra.mxu1 %v1768_v59  ;;  %1671 = vmatprep.subr.bf16.mxu0 %v1769_v60 }
  0x80   :  { %1693 = vmatprep.subr.bf16.mxu1 %v1770_v61 }
  0x82   :  { %1672 = vmatpush3.bf16.msra.mxu0 %v1771_v62 }
  0x83   :  { %1694 = vmatpush3.bf16.msra.mxu1 %v1772_v63  ;;  %1673 = vmatprep.subr.bf16.mxu0 %v1773_v0 }
  0x84   :  { %1695 = vmatprep.subr.bf16.mxu1 %v1774_v1 }
  0x86   :  { %1674 = vmatpush3.bf16.msra.mxu0 %v1775_v2 }
  0x87   :  { %1696 = vmatpush3.bf16.msra.mxu1 %v1776_v3  ;;  %1675 = vmatprep.subr.bf16.mxu0 %v1777_v4  ;;  %v814_v3 = vld [vmem:[#allocation8 + $0xc0] sm:$0xff] }
  0x88   :  { %1697 = vmatprep.subr.bf16.mxu1 %v1778_v5  ;;  %v818_v4 = vld [vmem:[#allocation8 + $0xe0] sm:$0xff]  ;;  %v815_v5 = vld [vmem:[#allocation8 + $0xc8] sm:$0xff] }
  0x89   :  { %v1569_v8 = vcombine.low %v814_v3, %v818_v4 }
  0x8a   :  { %1676 = vmatpush3.bf16.msra.mxu0 %v1779_v6  ;;  %v1570_v6 = vcombine.high %v814_v3, %v818_v4  ;;  %v808_v4 = vld [vmem:[#allocation8 + $0x90] sm:$0xff] }
  0x8b   :  { %1698 = vmatpush3.bf16.msra.mxu1 %v1780_v7  ;;  %1216 = vmatprep.subr.bf16.mxu0 %v1546_v20  ;;  %v819_v7 = vld [vmem:[#allocation8 + $0xe8] sm:$0xff]  ;;  %v834_v20 = vld [vmem:[#allocation8 + $0x160] sm:$0xff] }
  0x8c   :  { %1257 = vmatprep.subr.bf16.mxu1 %v1548_v25  ;;  %v1571_v9 = vcombine.low %v815_v5, %v819_v7  ;;  %v1572_v10 = vcombine.high %v815_v5, %v819_v7  ;;  %v842_v25 = vld [vmem:[#allocation8 + $0x1a0] sm:$0xff]  ;;  %v812_v5 = vld [vmem:[#allocation8 + $0xb0] sm:$0xff]  ;;  %v813_v7 = vld [vmem:[#allocation8 + $0xb8] sm:$0xff] }
  0x8d   :  { %728 = vmatmul.mubr.bf16.vlgmr.msra.gmra.mrb[4].mxu0 %v92_v14  ;;  %v1578_v14 = vcombine.high %v822_v11, %v826_v12  ;;  %v816_v11 = vld [vmem:[#allocation8 + $0xd0] sm:$0xff] }
  0x8e   :  { %768 = vmatmul.mubr.bf16.vlgmr.msra.gmra.mrb[4].mxu1 %v94_v15  ;;  %1217 = vmatpush1.bf16.msra.mxu0 %v1545_v19  ;;  %v827_v15 = vld [vmem:[#allocation8 + $0x128] sm:$0xff]  ;;  %v830_v19 = vld [vmem:[#allocation8 + $0x140] sm:$0xff]  ;;  %v820_v12 = vld [vmem:[#allocation8 + $0xf0] sm:$0xff] }
  0x8f   :  { %1258 = vmatpush1.bf16.msra.mxu1 %v1547_v24  ;;  %1218 = vmatprep.subr.bf16.mxu0 %v1554_v26  ;;  %v1579_v17 = vcombine.low %v823_v13, %v827_v15  ;;  %v1580_v18 = vcombine.high %v823_v13, %v827_v15  ;;  %v1586_v22 = vcombine.high %v830_v19, %v834_v20  ;;  %v838_v24 = vld [vmem:[#allocation8 + $0x180] sm:$0xff]  ;;  %v1989_v26 = vmov 0   ;;  %v817_v13 = vld [vmem:[#allocation8 + $0xd8] sm:$0xff] }
  0x90   :  { %1259 = vmatprep.subr.bf16.mxu1 %v1556_v30  ;;  %1248 = vmatprep.mubr.bf16.mxu0 %v1989_v26  ;;  %v1585_v27 = vcombine.low %v830_v19, %v834_v20  ;;  %v843_v30 = vld [vmem:[#allocation8 + $0x1a8] sm:$0xff]  ;;  %v1594_v32 = vcombine.high %v838_v24, %v842_v25  ;;  %v1565_v15 = vcombine.low %v808_v4, %v812_v5  ;;  %v824_v19 = vld [vmem:[#allocation8 + $0x110] sm:$0xff] }
  0x91   :  { %1289 = vmatprep.mubr.bf16.mxu1 %v1989_v26  ;;  %v828_v20 = vld [vmem:[#allocation8 + $0x130] sm:$0xff]  ;;  %v1573_v23 = vcombine.low %v816_v11, %v820_v12 }
  0x92   :  { %1219 = vmatpush1.bf16.msra.mxu0 %v1553_v34  ;;  %v850_v34 = vld [vmem:[#allocation8 + $0x1e0] sm:$0xff] }
  0x93   :  { %1260 = vmatpush1.bf16.msra.mxu1 %v1555_v35  ;;  %1220 = vmatprep.subr.bf16.mxu0 %v1562_v36  ;;  %v1596_v35 = vcombine.high %v839_v29, %v843_v30  ;;  %v792_v36 = vld [vmem:[#allocation8 + $0x10] sm:$0xff] }
  0x94   :  { %1261 = vmatprep.subr.bf16.mxu1 %v1564_v37  ;;  %v796_v37 = vld [vmem:[#allocation8 + $0x30] sm:$0xff] }
  0x96   :  { %1221 = vmatpush1.bf16.msra.mxu0 %v1561_v38  ;;  %v793_v38 = vld [vmem:[#allocation8 + $0x18] sm:$0xff] }
  0x97   :  { %1262 = vmatpush1.bf16.msra.mxu1 %v1563_v39  ;;  %1222 = vmatprep.subr.bf16.mxu0 %v1570_v6  ;;  %v847_v39 = vld [vmem:[#allocation8 + $0x1c8] sm:$0xff]  ;;  %v809_v6 = vld [vmem:[#allocation8 + $0x98] sm:$0xff] }
  0x98   :  { %1263 = vmatprep.subr.bf16.mxu1 %v1572_v10  ;;  %v1568_v10 = vcombine.high %v809_v6, %v813_v7 }
  0x9a   :  { %1223 = vmatpush1.bf16.msra.mxu0 %v1569_v8 }
  0x9b   :  { %1264 = vmatpush1.bf16.msra.mxu1 %v1571_v9  ;;  %1224 = vmatprep.subr.bf16.mxu0 %v1578_v14  ;;  %v1566_v9 = vcombine.high %v808_v4, %v812_v5  ;;  %v821_v14 = vld [vmem:[#allocation8 + $0xf8] sm:$0xff] }
  0x9c   :  { %1265 = vmatprep.subr.bf16.mxu1 %v1580_v18  ;;  %v1576_v18 = vcombine.high %v817_v13, %v821_v14 }
  0x9e   :  { %1225 = vmatpush1.bf16.msra.mxu0 %v1577_v16  ;;  %v1567_v16 = vcombine.low %v809_v6, %v813_v7 }
  0x9f   :  { %1266 = vmatpush1.bf16.msra.mxu1 %v1579_v17  ;;  %1226 = vmatprep.subr.bf16.mxu0 %v1586_v22  ;;  %v1574_v17 = vcombine.high %v816_v11, %v820_v12  ;;  %v829_v22 = vld [vmem:[#allocation8 + $0x138] sm:$0xff] }
  0xa0   :  { %1267 = vmatprep.subr.bf16.mxu1 %v1588_v28  ;;  %v836_v28 = vld [vmem:[#allocation8 + $0x170] sm:$0xff] }
  0xa2   :  { %1227 = vmatpush1.bf16.msra.mxu0 %v1585_v27  ;;  %v832_v27 = vld [vmem:[#allocation8 + $0x150] sm:$0xff] }
  0xa3   :  { %1268 = vmatpush1.bf16.msra.mxu1 %v1587_v31  ;;  %1228 = vmatprep.subr.bf16.mxu0 %v1594_v32  ;;  %v1581_v31 = vcombine.low %v824_v19, %v828_v20  ;;  %v1583_v32 = vcombine.low %v825_v21, %v829_v22 }
  0xa4   :  { %1269 = vmatprep.subr.bf16.mxu1 %v1596_v35  ;;  %v840_v35 = vld [vmem:[#allocation8 + $0x190] sm:$0xff] }
 0x140   :  { %v1633_v40 = vpop.f32.mrb[0].mxu0 }
 0x141   :  { %v1655_v41 = vpop.f32.mrb[0].mxu1  ;;  %v1634_v43 = vpop.f32.mrb[1].mxu0 }
 0x142   :  { %v1656_v44 = vpop.f32.mrb[1].mxu1  ;;  %v1635_v45 = vadd.f32 %v1634_v43, %v1633_v40  ;;  %v1636_v47 = vpop.f32.mrb[2].mxu0  ;;  %v851_v40 = vld [vmem:[#allocation8 + $0x1e8] sm:$0xff]  ;;  %v1593_v43 = vcombine.low %v838_v24, %v842_v25  ;;  %v1575_v24 = vcombine.low %v817_v13, %v821_v14  ;;  %v1582_v25 = vcombine.high %v824_v19, %v828_v20 }
 0x143   :  { %v1657_v46 = vadd.f32 %v1656_v44, %v1655_v41  ;;  %v1658_v48 = vpop.f32.mrb[2].mxu1  ;;  %v1637_v49 = vpop.f32.mrb[3].mxu0  ;;  %v1549_v41 = vcombine.low %v792_v36, %v796_v37  ;;  %v1604_v47 = vcombine.high %v847_v39, %v851_v40 }
 0x144   :  { %v1659_v50 = vpop.f32.mrb[3].mxu1  ;;  %v650_v51 = vadd.f32 %v1635_v45, %v1480_v42  ;;  %v797_v42 = vld [vmem:[#allocation8 + $0x38] sm:$0xff]  ;;  %v1595_v45 = vcombine.low %v839_v29, %v843_v30  ;;  %1229 = vmatpush1.bf16.msra.mxu0 %v1593_v43  ;;  %v1601_v48 = vcombine.low %v846_v33, %v850_v34  ;;  %v1603_v49 = vcombine.low %v847_v39, %v851_v40  ;;  %v848_v43 = vld [vmem:[#allocation8 + $0x1d0] sm:$0xff] }
 0x145   :  { %v1551_v44 = vcombine.low %v793_v38, %v797_v42  ;;  %v1550_v50 = vcombine.high %v792_v36, %v796_v37  ;;  %v833_v29 = vld [vmem:[#allocation8 + $0x158] sm:$0xff]  ;;  %v844_v36 = vld [vmem:[#allocation8 + $0x1b0] sm:$0xff]  ;;  %v1589_v39 = vcombine.low %v832_v27, %v836_v28 }
 0x146   :  { %v690_v52 = vadd.f32 %v1657_v46, %v650_v51  ;;  %v1602_v46 = vcombine.high %v846_v33, %v850_v34  ;;  %1270 = vmatpush1.bf16.msra.mxu1 %v1595_v45  ;;  %v1552_v51 = vcombine.high %v793_v38, %v797_v42  ;;  %v837_v30 = vld [vmem:[#allocation8 + $0x178] sm:$0xff]  ;;  %v1590_v33 = vcombine.high %v832_v27, %v836_v28 }
 0x147   :  { %1271 = vmatprep.subr.bf16.mxu1 %v1604_v47  ;;  %v1592_v34 = vcombine.high %v833_v29, %v837_v30  ;;  %v841_v37 = vld [vmem:[#allocation8 + $0x198] sm:$0xff]  ;;  %v1591_v40 = vcombine.low %v833_v29, %v837_v30  ;;  %v1597_v47 = vcombine.low %v840_v35, %v844_v36 }
 0x148   :  { %1230 = vmatprep.subr.bf16.mxu0 %v1602_v46  ;;  %v845_v38 = vld [vmem:[#allocation8 + $0x1b8] sm:$0xff] }
 0x149   :  { %1231 = vmatpush1.bf16.msra.mxu0 %v1601_v48  ;;  %v1600_v42 = vcombine.high %v841_v37, %v845_v38  ;;  %v849_v45 = vld [vmem:[#allocation8 + $0x1d8] sm:$0xff]  ;;  %v1599_v48 = vcombine.low %v841_v37, %v845_v38 }
 0x14a   :  { %1272 = vmatpush1.bf16.msra.mxu1 %v1603_v49  ;;  %1298 = vmatprep.subr.bf16.mxu0 %v1550_v50  ;;  %v853_v46 = vld [vmem:[#allocation8 + $0x1f8] sm:$0xff] }
 0x14b   :  { %1339 = vmatprep.subr.bf16.mxu1 %v1552_v51  ;;  %v1608_v50 = vcombine.high %v849_v45, %v853_v46 }
 0x160   :  { %v1677_v53 = vpop.f32.mrb[4].mxu0 }
 0x161   :  { %v1699_v54 = vpop.f32.mrb[4].mxu1  ;;  %v1678_v55 = vpop.f32.mrb[5].mxu0 }
 0x162   :  { %v1679_v56 = vadd.f32 %v1678_v55, %v1677_v53  ;;  %v1700_v57 = vpop.f32.mrb[5].mxu1  ;;  %v1680_v58 = vpop.f32.mrb[6].mxu0  ;;  %v785_v55 = vld [vmem:[#allocation5] sm:$0xff] }
 0x163   :  { %v1701_v59 = vadd.f32 %v1700_v57, %v1699_v54  ;;  %v1702_v60 = vpop.f32.mrb[6].mxu1  ;;  %v1681_v61 = vpop.f32.mrb[7].mxu0 }
 0x164   :  { %v730_v62 = vadd.f32 %v1679_v56, %v690_v52  ;;  %v1703_v63 = vpop.f32.mrb[7].mxu1  ;;  %v786_v56 = vmul.f32 0.1, %v785_v55  ;;  %v804_v60 = vld [vmem:[#allocation8 + $0x70] sm:$0xff]  ;;  %v801_v61 = vld [vmem:[#allocation8 + $0x58] sm:$0xff] }
 0x166   :  { %v770_v0 = vadd.f32 %v1701_v59, %v730_v62  ;;  %v800_v59 = vld [vmem:[#allocation8 + $0x50] sm:$0xff]  ;;  %v805_v62 = vld [vmem:[#allocation8 + $0x78] sm:$0xff] }
 0x167   :  { %v1560_v3 = vcombine.high %v801_v61, %v805_v62  ;;  %v1559_v8 = vcombine.low %v801_v61, %v805_v62 }
 0x168   :  { %1781 = vtanh.f32 %v770_v0 }
 0x172   :  { %v2089_v1 = vpop.eup %1781 }
 0x173   :  { %776 = vst [vmem:[#allocation10] sm:$0xff] %v2089_v1  ;;  %v777_v2 = vmul.f32 %v2089_v1, %v2089_v1 }
 0x175   :  { %778 = vadd.xlane.f32.xlu0 %v777_v2  ;;  %v1558_v2 = vcombine.high %v800_v59, %v804_v60 }
 0x202   :  { %v779_v52 = vpop.xlane.xlu0 %778 }
 0x203   :  { %v781_v53 = vmul.f32 0.0078125, %v779_v52  ;;  %v1607_v52 = vcombine.low %v849_v45, %v853_v46 }
 0x205   :  { %v782_v54 = vadd.f32 1e-08, %v781_v53 }
 0x207   :  { %1783 = vrsqrt.f32 %v782_v54 }
 0x211   :  { %v1784_v57 = vpop.eup %1783 }
 0x212   :  { %v784_v58 = vmul.f32 %v1784_v57, %v2089_v1  ;;  %v1557_v1 = vcombine.low %v800_v59, %v804_v60 }
 0x214   :  { %v787_v63 = vadd.f32 %v786_v56, %v784_v58 }
 0x216   :  { %v2097_v0 = vpack.c.bf16 %v787_v63, %v787_v63  ;;  %788 = vst [vmem:[#allocation11] sm:$0xff] %v787_v63 }
 0x218   :  { %1249 = vmatmul.mubr.bf16.vlgmr.msra.gmra.mrb[8].mxu0 %v2097_v0  ;;  %1290 = vmatmul.mubr.bf16.vlgmr.msra.gmra.mrb[8].mxu1 %v2097_v0 }
 0x219   :  { %1299 = vmatpush1.bf16.msra.mxu0 %v1549_v41  ;;  %1340 = vmatpush1.bf16.msra.mxu1 %v1551_v44  ;;  %v1598_v41 = vcombine.high %v840_v35, %v844_v36  ;;  %v852_v44 = vld [vmem:[#allocation8 + $0x1f0] sm:$0xff] }
 0x21a   :  { %1300 = vmatprep.subr.bf16.mxu0 %v1558_v2  ;;  %1341 = vmatprep.subr.bf16.mxu1 %v1560_v3  ;;  %v1606_v49 = vcombine.high %v848_v43, %v852_v44  ;;  %v1605_v51 = vcombine.low %v848_v43, %v852_v44 }
 0x21b   :  { %1330 = vmatprep.mubr.bf16.mxu0 %v1989_v26  ;;  %1371 = vmatprep.mubr.bf16.mxu1 %v1989_v26  ;;  %v1584_v26 = vcombine.high %v825_v21, %v829_v22 }
 0x21d   :  { %1301 = vmatpush1.bf16.msra.mxu0 %v1557_v1  ;;  %1342 = vmatpush1.bf16.msra.mxu1 %v1559_v8 }
 0x21e   :  { %1302 = vmatprep.subr.bf16.mxu0 %v1566_v9  ;;  %1343 = vmatprep.subr.bf16.mxu1 %v1568_v10 }
 0x221   :  { %1303 = vmatpush1.bf16.msra.mxu0 %v1565_v15  ;;  %1344 = vmatpush1.bf16.msra.mxu1 %v1567_v16 }
 0x222   :  { %1304 = vmatprep.subr.bf16.mxu0 %v1574_v17  ;;  %1345 = vmatprep.subr.bf16.mxu1 %v1576_v18 }
 0x225   :  { %1305 = vmatpush1.bf16.msra.mxu0 %v1573_v23  ;;  %1346 = vmatpush1.bf16.msra.mxu1 %v1575_v24 }
 0x226   :  { %1306 = vmatprep.subr.bf16.mxu0 %v1582_v25  ;;  %1347 = vmatprep.subr.bf16.mxu1 %v1584_v26 }
 0x229   :  { %1307 = vmatpush1.bf16.msra.mxu0 %v1581_v31  ;;  %1348 = vmatpush1.bf16.msra.mxu1 %v1583_v32 }
 0x22a   :  { %1308 = vmatprep.subr.bf16.mxu0 %v1590_v33  ;;  %1349 = vmatprep.subr.bf16.mxu1 %v1592_v34 }
 0x22d   :  { %1309 = vmatpush1.bf16.msra.mxu0 %v1589_v39  ;;  %1350 = vmatpush1.bf16.msra.mxu1 %v1591_v40 }
 0x22e   :  { %1310 = vmatprep.subr.bf16.mxu0 %v1598_v41  ;;  %1351 = vmatprep.subr.bf16.mxu1 %v1600_v42 }
 0x231   :  { %1311 = vmatpush1.bf16.msra.mxu0 %v1597_v47  ;;  %1352 = vmatpush1.bf16.msra.mxu1 %v1599_v48 }
 0x232   :  { %1312 = vmatprep.subr.bf16.mxu0 %v1606_v49  ;;  %1353 = vmatprep.subr.bf16.mxu1 %v1608_v50 }
 0x235   :  { %1313 = vmatpush1.bf16.msra.mxu0 %v1605_v51  ;;  %1354 = vmatpush1.bf16.msra.mxu1 %v1607_v52 }
 0x238   :  { %1331 = vmatmul.mubr.bf16.vlgmr.msra.gmra.mrb[12].mxu0 %v2097_v0  ;;  %1372 = vmatmul.mubr.bf16.vlgmr.msra.gmra.mrb[12].mxu1 %v2097_v0 }
 0x239   :  { %1916 = shalt.err (!%p1913_p8)
}
 0x23a   :  { %s1917_s0 = scalar_lea.hbm %s2151_s7, 128 }
 0x23b   :  { %p1918_p9 = scmp.ne.s32.totalorder %s2151_s7, %s1917_s0  ;;  %p1921_p10 = scmp.lt.u32.totalorder %s1917_s0, %s2151_s7 }
 0x23d   :  { %p1923_p11 = pnand %p1921_p10, %p1918_p9 }
 0x23f   :  { %1926 = shalt.err (!%p1923_p11)
}
 0x240   :  { %1455 = dma.vmem_to_hbm [thread:$0]  %s1453_s11, 128, %s2151_s7, [#allocation12]  }
 0x241   :  { %s1927_s22 = scalar_lea.vmem %s1443_s13, 128  ;;  %p1932_p13 = scmp.lt.s32.totalorder %s1443_s13, %s1443_s13 }
 0x242   :  { %p1928_p12 = scmp.ne.s32.totalorder %s1443_s13, %s1927_s22  ;;  %p1933_p0 = scmp.lt.s32.totalorder %s1927_s22, %s1927_s22 }
 0x244   :  { %p1934_p1 = por %p1933_p0, %p1932_p13 }
 0x246   :  { %p1935_p2 = pnand %p1934_p1, %p1928_p12 }
 0x248   :  { %1938 = shalt.err (!%p1935_p2)
}
 0x249   :  { %s1939_s25 = scalar_lea.hbm %s2150_s6, 128 }
 0x24a   :  { %p1940_p3 = scmp.ne.s32.totalorder %s2150_s6, %s1939_s25  ;;  %p1943_p4 = scmp.lt.u32.totalorder %s1939_s25, %s2150_s6 }
 0x24c   :  { %p1945_p5 = pnand %p1943_p4, %p1940_p3 }
 0x24e   :  { %1948 = shalt.err (!%p1945_p5)
}
 0x24f   :  { %1445 = dma.vmem_to_hbm [thread:$0]  %s1443_s13, 128, %s2150_s6, [#allocation4]   ;;  %v856_v53 = vlaneseq  ;;  %v854_v57 = vld [vmem:[%s2149_s5] sm:$0xff] }
 0x250   :  { %s1992_s5 = smov [#allocation13]  }
 0x251   :  { %v857_v54 = vshrl.u32 %v856_v53, 7  ;;  %s1462_s6 = sshll.u32 %s1992_s5, 4  ;;  %s1463_s6 = int_to_ptr.vmem [resolvable:$true] %s1462_s6 }
 0x252   :  { %s1949_s4 = scalar_lea.vmem %s1463_s6, 1024  ;;  %p1954_p7 = scmp.lt.s32.totalorder %s1463_s6, %s1463_s6 }
 0x253   :  { %v858_v55 = vsub.s32 0, %v857_v54  ;;  %v866_v56 = vsub.s32 2, %v857_v54  ;;  %v862_v58 = vsub.s32 1, %v857_v54  ;;  %v870_v59 = vsub.s32 3, %v857_v54  ;;  %p1950_p6 = scmp.ne.s32.totalorder %s1463_s6, %s1949_s4  ;;  %p1955_p8 = scmp.lt.s32.totalorder %s1949_s4, %s1949_s4 }
 0x254   :  { %v874_v24 = vsub.s32 4, %v857_v54  ;;  %v882_v25 = vsub.s32 6, %v857_v54  ;;  %v878_v26 = vsub.s32 5, %v857_v54  ;;  %v886_v27 = vsub.s32 7, %v857_v54 }
 0x255   :  { %v859_v60 = vrot.slane %v854_v57, %v858_v55  ;;  %v867_v61 = vrot.slane %v854_v57, %v866_v56  ;;  %v863_v62 = vrot.slane %v854_v57, %v862_v58  ;;  %v871_v63 = vrot.slane %v854_v57, %v870_v59  ;;  %p1956_p9 = por %p1955_p8, %p1954_p7 }
 0x256   :  { %v875_v30 = vrot.slane %v854_v57, %v874_v24  ;;  %v883_v31 = vrot.slane %v854_v57, %v882_v25  ;;  %v879_v33 = vrot.slane %v854_v57, %v878_v26  ;;  %v887_v34 = vrot.slane %v854_v57, %v886_v27 }
 0x257   :  { %p1957_p10 = pnand %p1956_p9, %p1950_p6 }
 0x2eb   :  { %v1250_v0 = vpop.f32.mrb[8].mxu0  ;;  %v1291_v2 = vpop.f32.mrb[8].mxu1 }
 0x2ec   :  { %v1251_v3 = vadd.f32 %v1250_v0, %v859_v60  ;;  %v1292_v4 = vadd.f32 %v1291_v2, %v867_v61  ;;  %v1252_v5 = vpop.f32.mrb[9].mxu0  ;;  %v1293_v6 = vpop.f32.mrb[9].mxu1 }
 0x2ed   :  { %v1253_v7 = vadd.f32 %v1252_v5, %v863_v62  ;;  %v1294_v1 = vadd.f32 %v1293_v6, %v871_v63  ;;  %v1254_v8 = vpop.f32.mrb[10].mxu0  ;;  %v1295_v9 = vpop.f32.mrb[10].mxu1 }
 0x2ee   :  { %v1609_v10 = vmul.f32 -1.442695, %v1251_v3  ;;  %v1611_v11 = vmul.f32 -1.442695, %v1292_v4  ;;  %v1255_v12 = vpop.f32.mrb[11].mxu0  ;;  %v1296_v13 = vpop.f32.mrb[11].mxu1 }
 0x2ef   :  { %v1610_v14 = vmul.f32 -1.442695, %v1253_v7  ;;  %v1612_v15 = vmul.f32 -1.442695, %v1294_v1 }
 0x2f0   :  { %1785 = vpow2.f32 %v1609_v10 }
 0x2f1   :  { %1787 = vpow2.f32 %v1611_v11 }
 0x2f2   :  { %1789 = vpow2.f32 %v1610_v14 }
 0x2f3   :  { %1791 = vpow2.f32 %v1612_v15 }
 0x2fa   :  { %v1786_v16 = vpop.eup %1785 }
 0x2fb   :  { %v1788_v17 = vpop.eup %1787  ;;  %v1404_v18 = vadd.f32 1.0, %v1786_v16 }
 0x2fc   :  { %v1790_v19 = vpop.eup %1789  ;;  %v1406_v20 = vadd.f32 1.0, %v1788_v17 }
 0x2fd   :  { %v1792_v21 = vpop.eup %1791  ;;  %1793 = vrcp.f32 %v1404_v18  ;;  %v1405_v22 = vadd.f32 1.0, %v1790_v19 }
 0x2fe   :  { %1795 = vrcp.f32 %v1406_v20  ;;  %v1407_v23 = vadd.f32 1.0, %v1792_v21 }
 0x2ff   :  { %1797 = vrcp.f32 %v1405_v22 }
 0x300   :  { %1799 = vrcp.f32 %v1407_v23 }
 0x307   :  { %v1794_v28 = vpop.eup %1793 }
 0x308   :  { %v1796_v29 = vpop.eup %1795  ;;  %1428 = vst [vmem:[#allocation13] sm:$0xff] %v1794_v28 }
 0x309   :  { %v1798_v32 = vpop.eup %1797  ;;  %1430 = vst [vmem:[#allocation13 + $0x10] sm:$0xff] %v1796_v29 }
 0x30a   :  { %v1800_v35 = vpop.eup %1799  ;;  %1429 = vst [vmem:[#allocation13 + $0x8] sm:$0xff] %v1798_v32 }
 0x30b   :  { %1431 = vst [vmem:[#allocation13 + $0x18] sm:$0xff] %v1800_v35  ;;  %v1332_v36 = vpop.f32.mrb[12].mxu0  ;;  %v1373_v37 = vpop.f32.mrb[12].mxu1 }
 0x30c   :  { %v1333_v38 = vadd.f32 %v1332_v36, %v875_v30  ;;  %v1374_v39 = vadd.f32 %v1373_v37, %v883_v31  ;;  %v1334_v40 = vpop.f32.mrb[13].mxu0  ;;  %v1375_v41 = vpop.f32.mrb[13].mxu1 }
 0x30d   :  { %v1335_v42 = vadd.f32 %v1334_v40, %v879_v33  ;;  %v1376_v43 = vadd.f32 %v1375_v41, %v887_v34  ;;  %v1336_v44 = vpop.f32.mrb[14].mxu0  ;;  %v1377_v45 = vpop.f32.mrb[14].mxu1 }
 0x30e   :  { %v1613_v46 = vmul.f32 -1.442695, %v1333_v38  ;;  %v1615_v47 = vmul.f32 -1.442695, %v1374_v39  ;;  %v1337_v48 = vpop.f32.mrb[15].mxu0  ;;  %v1378_v49 = vpop.f32.mrb[15].mxu1 }
 0x30f   :  { %v1614_v50 = vmul.f32 -1.442695, %v1335_v42  ;;  %v1616_v51 = vmul.f32 -1.442695, %v1376_v43 }
 0x310   :  { %1801 = vpow2.f32 %v1613_v46 }
 0x311   :  { %1803 = vpow2.f32 %v1615_v47 }
 0x312   :  { %1805 = vpow2.f32 %v1614_v50 }
 0x313   :  { %1807 = vpow2.f32 %v1616_v51 }
 0x31a   :  { %v1802_v52 = vpop.eup %1801 }
 0x31b   :  { %v1804_v53 = vpop.eup %1803  ;;  %v1408_v54 = vadd.f32 1.0, %v1802_v52 }
 0x31c   :  { %v1806_v55 = vpop.eup %1805  ;;  %v1410_v56 = vadd.f32 1.0, %v1804_v53 }
 0x31d   :  { %v1808_v57 = vpop.eup %1807  ;;  %1809 = vrcp.f32 %v1408_v54  ;;  %v1409_v58 = vadd.f32 1.0, %v1806_v55 }
 0x31e   :  { %1811 = vrcp.f32 %v1410_v56  ;;  %v1411_v59 = vadd.f32 1.0, %v1808_v57 }
 0x31f   :  { %1813 = vrcp.f32 %v1409_v58 }
 0x320   :  { %1815 = vrcp.f32 %v1411_v59 }
 0x327   :  { %v1810_v60 = vpop.eup %1809 }
 0x328   :  { %v1812_v61 = vpop.eup %1811  ;;  %1432 = vst [vmem:[#allocation13 + $0x20] sm:$0xff] %v1810_v60 }
 0x329   :  { %v1814_v62 = vpop.eup %1813  ;;  %1434 = vst [vmem:[#allocation13 + $0x30] sm:$0xff] %v1812_v61 }
 0x32a   :  { %v1816_v63 = vpop.eup %1815  ;;  %1433 = vst [vmem:[#allocation13 + $0x28] sm:$0xff] %v1814_v62 }
 0x32b   :  { %1435 = vst [vmem:[#allocation13 + $0x38] sm:$0xff] %v1816_v63 }
 0x32c   :  { %1960 = shalt.err (!%p1957_p10)
}
 0x32d   :  { %s1961_s11 = scalar_lea.hbm %s2152_s8, 1024 }
 0x32e   :  { %p1962_p11 = scmp.ne.s32.totalorder %s2152_s8, %s1961_s11  ;;  %p1965_p12 = scmp.lt.u32.totalorder %s1961_s11, %s2152_s8 }
 0x330   :  { %p1967_p13 = pnand %p1965_p12, %p1962_p11 }
 0x332   :  { %1970 = shalt.err (!%p1967_p13)
}
 0x333   :  { %1465 = dma.vmem_to_hbm [thread:$0]  %s1463_s6, 1024, %s2152_s8, [#allocation12]  }
 0x334   :  { %1977 = dma.done.wait [#allocation4], 128  }
 0x335   :  { %1978 = vsyncadd [#allocation4], 4294967168 }
 0x336   :  { %1979 = dma.done.wait [#allocation12], 1152  }
 0x337   :  { %1980 = vsyncadd [#allocation12], 4294966144 }
 0x338   :  { %1475 = vsyncpa [#allocation3], 1 }
 0x339   :  { %1476 = vsyncpa [#allocation6], 1 }
 0x33a   :  { %1477 = vsyncpa [#allocation9], 1 }
 0x33b   :  { %1478 = vsyncpa [#allocation4], 1 }
 0x33c   :  { %1479 = vsyncpa [#allocation12], 1 }

</bundles_post_ra>
